<compile_context>
chip_gen: v7x
topology: tpu7x:2x2x1
jax: 0.10.0
libtpu: 0.0.40
codegen_flags: <defaults>
</compile_context>

<pallas_src>
import jax
import jax.numpy as jnp
from jax.experimental import pallas as pl
from jax.experimental.pallas import tpu as pltpu


def _round_up(v, m):
    return ((v + m - 1) // m) * m


# ----------------------------------------------------------------------------- kernel
def _spatial_attention_kernel(x_ref, mcat_ref, bs_ref, vst_ref, invd_ref, out_ref):
    bt, N, K = x_ref.shape
    Np = out_ref.shape[-1]
    T = mcat_ref.shape[-1] // 2

    mcat = mcat_ref[...]                       # (K, 2T)  [W1*W2 | W3*I] folded weights
    bs = bs_ref[...]                           # (N, N)
    vst = vst_ref[...]                         # (N, Np)  V_s^T with lane-padded columns
    inv = invd_ref[...].reshape(1, 1, Np)      # 1 / batch-0 column sums (precomputed)

    if N % 8 == 0:
        # Flatten batch into the sublane axis: one big MXU push instead of bt tiny
        # batched ones.  Leading-dim reshapes are layout-free since N % 8 == 0.
        x2d = x_ref[...].reshape(bt * N, K)
        xm = jnp.dot(x2d, mcat, preferred_element_type=jnp.float32)     # (bt*N, 2T)
        lhs = xm[:, :T].reshape(bt, N, T)
        rhs = xm[:, T:].reshape(bt, N, T)
    else:
        xm = jax.lax.dot_general(x_ref[...], mcat, (((2,), (0,)), ((), ())),
                                 preferred_element_type=jnp.float32)    # (bt, N, 2T)
        lhs = xm[..., :T]
        rhs = xm[..., T:]

    # product[b,i,j] = sum_t lhs[b,i,t] * rhs[b,j,t]   (genuinely batched matmul)
    product = jax.lax.dot_general(lhs, rhs, (((2,), (2,)), ((0,), (0,))),
                                  preferred_element_type=jnp.float32)   # (bt, N, N)

    sig = jax.nn.sigmoid(product + bs)                                  # b_s broadcast

    # S[b,i,j] = sum_k sig[b,i,k] * V_s[j,k]  ==  sig @ V_s^T   (lane-padded columns)
    if N % 8 == 0:
        S = jnp.dot(sig.reshape(bt * N, N), vst,
                    preferred_element_type=jnp.float32).reshape(bt, N, Np)
    else:
        S = jax.lax.dot_general(sig, vst, (((2,), (0,)), ((), ())),
                                preferred_element_type=jnp.float32)     # (bt, N, Np)

    # torch: S - max(S, dim=1, keepdims=True)[0]  (per-column max over node axis i)
    S = S - jnp.max(S, axis=1, keepdims=True)
    e = jnp.exp(S)

    # torch quirk: every batch element is normalized by batch 0's column sums.  The
    # reciprocal of that (1, Np) vector is precomputed in the wrapper, so the grid
    # is embarrassingly parallel over the batch axis (lane-dense unmasked stores).
    out_ref[...] = e * inv


# ------------------------------------------------------------------------ VMEM model
def _vmem_capacity_bytes():
    try:
        return int(pltpu.get_tpu_info().vmem_capacity_bytes)
    except Exception:
        return 64 * 1024 * 1024    # conservative (v7x-sized) fallback


def _tile_footprint_bytes(bt, N, K, T, Np):
    """Per-grid-step f32 VMEM: double-buffered pipeline blocks + live temporaries."""
    f32 = 4
    lane = lambda d: _round_up(max(d, 1), 128)
    sub = lambda d: _round_up(max(d, 1), 8)
    x_blk = 2 * bt * sub(N) * lane(K) * f32                 # x tile, double-buffered
    o_blk = 2 * bt * sub(N) * lane(Np) * f32                # out tile, double-buffered
    params = 2 * (sub(K) * lane(2 * T) + sub(N) * lane(N)
                  + sub(N) * lane(Np) + sub(1) * lane(Np)) * f32
    temps = bt * (sub(N) * lane(2 * T)                      # xm
                  + 2 * sub(N) * lane(T)                    # lhs, rhs
                  + 2 * sub(N) * lane(N)                    # product, sigmoid
                  + 3 * sub(N) * lane(Np)) * f32            # S, exp, store staging
    return x_blk + o_blk + params + temps


def _pick_batch_tile(B, N, K, T, Np, budget):
    divisors = [d for d in range(1, B + 1) if B % d == 0]
    fitting = [d for d in divisors if _tile_footprint_bytes(d, N, K, T, Np) <= budget]
    if not fitting:
        return 1
    best = max(fitting)
    # Prefer MXU-row-aligned bt*N (256 on v6e/v7x, 128 on v5e) if it costs at most
    # a 2x reduction of the batch tile; otherwise keep the largest fitting tile.
    for row in (256, 128):
        aligned = [d for d in fitting if (d * N) % row == 0 and 2 * d >= best]
        if aligned:
            return max(aligned)
    return best


# -------------------------------------------------------------------------- wrapper
def spatial_attention(x, w1, w2, w3, b_s, v_s):
    B, N, F, T = x.shape
    K = F * T
    Np = _round_up(N, 128)                               # lane-dense output columns

    x_flat = x.reshape(B, N, K).astype(jnp.float32)      # lane-dense (f,t) -> f*T + t

    w1 = w1.astype(jnp.float32).reshape(T)
    w2 = w2.astype(jnp.float32)
    w3 = w3.astype(jnp.float32).reshape(F)

    # Folded parameter matrices: the x contractions become one (bt*N,K)@(K,2T) matmul.
    m_lhs = (w1[None, :, None] * w2[:, None, :]).reshape(K, T)                  # W1[t]*W2[f,t']
    m_rhs = (w3[:, None, None] * jnp.eye(T, dtype=jnp.float32)).reshape(K, T)   # W3[f]*delta(t,t')
    m_cat = jnp.concatenate([m_lhs, m_rhs], axis=1)                             # (K, 2T)

    bs2d = b_s.astype(jnp.float32).reshape(N, N)
    vst = v_s.astype(jnp.float32).T                                             # (N, N)
    vst_pad = jnp.pad(vst, ((0, 0), (0, Np - N))) if Np != N else vst           # pad cols only

    # Tiny plain-JAX pre-pass: batch-0 column sums of exp (the torch `[0]` quirk),
    # externalized so the kernel's batch grid axis can run in parallel (v7x megacore).
    xm0 = x_flat[0] @ m_cat                              # (N, 2T)
    sig0 = jax.nn.sigmoid(xm0[:, :T] @ xm0[:, T:].T + bs2d)
    S0 = sig0 @ vst_pad                                  # (N, Np)
    e0 = jnp.exp(S0 - jnp.max(S0, axis=0, keepdims=True))
    inv_denom = 1.0 / jnp.sum(e0, axis=0, keepdims=True)  # (1, Np)

    cap = _vmem_capacity_bytes()
    budget = min(cap // 4, 24 * 1024 * 1024)             # 16 MiB on v7x, 24 MiB on v5e/v6e
    bt = _pick_batch_tile(B, N, K, T, Np, budget)
    footprint = _tile_footprint_bytes(bt, N, K, T, Np)
    vmem_limit = int(min(3 * cap // 4, max(32 * 1024 * 1024, 2 * footprint)))

    grid = (B // bt,)
    grid_spec = pltpu.PrefetchScalarGridSpec(
        num_scalar_prefetch=0,
        grid=grid,
        in_specs=[
            pl.BlockSpec((bt, N, K), lambda s: (s, 0, 0)),    # x batch tile
            pl.BlockSpec((K, 2 * T), lambda s: (0, 0)),       # [M_lhs | M_rhs]
            pl.BlockSpec((N, N), lambda s: (0, 0)),           # b_s
            pl.BlockSpec((N, Np), lambda s: (0, 0)),          # V_s^T (lane padded)
            pl.BlockSpec((1, Np), lambda s: (0, 0)),          # 1 / batch-0 denominator
        ],
        out_specs=pl.BlockSpec((bt, N, Np), lambda s: (s, 0, 0)),
    )

    out = pl.pallas_call(
        _spatial_attention_kernel,
        out_shape=jax.ShapeDtypeStruct((B, N, Np), jnp.float32),
        grid_spec=grid_spec,
        compiler_params=pltpu.CompilerParams(
            dimension_semantics=("parallel",),   # no cross-step dependency anymore
            vmem_limit_bytes=vmem_limit),
    )(x_flat, m_cat, bs2d, vst_pad, inv_denom)

    return out[..., :N] if Np != N else out


# ------------------------------------------------------------------------- reference
def reference_spatial_attention(x, w1, w2, w3, b_s, v_s):
    """Plain-JAX mirror of the PyTorch forward (incl. the `[0]` quirk on the sum)."""
    lhs = jnp.einsum("bnft,t->bnf", x, w1) @ w2                  # (B, N, T)
    rhs_nt = jnp.einsum("bnft,f->bnt", x, w3)                    # (B, N, T) (= rhs^T)
    product = jnp.einsum("bnt,bmt->bnm", lhs, rhs_nt)            # (B, N, N)
    sig = jax.nn.sigmoid(product + b_s)
    S = jnp.einsum("bik,jk->bij", sig, v_s)                      # (B, N, N)
    S = S - jnp.max(S, axis=1, keepdims=True)
    e = jnp.exp(S)
    denom = jnp.sum(e, axis=1, keepdims=True)[0]                 # (1, N): batch-0 sums
    return e / denom


if __name__ == "__main__":
    # num_of_nodes N = 16, num_of_features F = 4, num_time_step T = 8, batch B = 2
    B, N, F, T = 2, 16, 4, 8

    key = jax.random.PRNGKey(0)
    x = 0.5 * jax.random.normal(key, (B, N, F, T), dtype=jnp.float32)

    # Deterministic parameter init, exactly as in the module's __init__ (all ones).
    W_1 = jnp.ones((T,), jnp.float32)
    W_2 = jnp.ones((F, T), jnp.float32)
    W_3 = jnp.ones((F,), jnp.float32)
    b_s = jnp.ones((1, N, N), jnp.float32)
    V_s = jnp.ones((N, N), jnp.float32)

    out = spatial_attention(x, W_1, W_2, W_3, b_s, V_s)
    out = jax.block_until_ready(out)

    ref = reference_spatial_attention(x, W_1, W_2, W_3, b_s, V_s)
    assert out.shape == (B, N, N) and out.dtype == jnp.float32
    # Tolerance allows for MXU f32 accumulation-order differences and the exp()
    # amplification of tiny matmul rounding deltas; genuine semantic errors
    # produce O(1) deviations.
    assert jnp.allclose(out, ref, rtol=1e-3, atol=1e-3), \
        float(jnp.max(jnp.abs(out - ref)))

    print("KERNEL_OK")
</pallas_src>

<mosaic_0001>
module attributes {stable_mosaic.version = 11 : i64} {
  func.func @_spatial_attention_kernel(%arg0: i32, %arg1: memref<2x16x32xf32, #tpu.memory_space<vmem>>, %arg2: memref<32x16xf32, #tpu.memory_space<vmem>>, %arg3: memref<16x16xf32, #tpu.memory_space<vmem>>, %arg4: memref<16x128xf32, #tpu.memory_space<vmem>>, %arg5: memref<1x128xf32, #tpu.memory_space<vmem>>, %arg6: memref<2x16x128xf32, #tpu.memory_space<vmem>>) attributes {dimension_semantics = [#tpu.dimension_semantics<parallel>], iteration_bounds = array<i64: 1>, scalar_prefetch = 0 : i64, scratch_operands = 0 : i64, tpu.core_type = #tpu.core_type<tc>, window_params = [{transform_indices = @transform_0, window_bounds = array<i64: 2, 16, 32>}, {pipeline_mode = #tpu.pipeline_mode<synchronous>, transform_indices = @transform_1, window_bounds = array<i64: 32, 16>}, {pipeline_mode = #tpu.pipeline_mode<synchronous>, transform_indices = @transform_2, window_bounds = array<i64: 16, 16>}, {pipeline_mode = #tpu.pipeline_mode<synchronous>, transform_indices = @transform_3, window_bounds = array<i64: 16, 128>}, {pipeline_mode = #tpu.pipeline_mode<synchronous>, transform_indices = @transform_4, window_bounds = array<i64: 1, 128>}, {transform_indices = @transform_5, window_bounds = array<i64: 2, 16, 128>}]} {
    %c0 = arith.constant 0 : index
    %c0_0 = arith.constant 0 : index
    %0 = vector.load %arg2[%c0, %c0_0] : memref<32x16xf32, #tpu.memory_space<vmem>>, vector<32x16xf32>
    %c0_1 = arith.constant 0 : index
    %c0_2 = arith.constant 0 : index
    %1 = vector.load %arg3[%c0_1, %c0_2] : memref<16x16xf32, #tpu.memory_space<vmem>>, vector<16x16xf32>
    %c0_3 = arith.constant 0 : index
    %c0_4 = arith.constant 0 : index
    %2 = vector.load %arg4[%c0_3, %c0_4] : memref<16x128xf32, #tpu.memory_space<vmem>>, vector<16x128xf32>
    %c0_5 = arith.constant 0 : index
    %c0_6 = arith.constant 0 : index
    %3 = vector.load %arg5[%c0_5, %c0_6] : memref<1x128xf32, #tpu.memory_space<vmem>>, vector<1x128xf32>
    %4 = vector.shape_cast %3 : vector<1x128xf32> to vector<1x1x128xf32>
    %c0_7 = arith.constant 0 : index
    %c0_8 = arith.constant 0 : index
    %c0_9 = arith.constant 0 : index
    %5 = vector.load %arg1[%c0_7, %c0_8, %c0_9] : memref<2x16x32xf32, #tpu.memory_space<vmem>>, vector<2x16x32xf32>
    %6 = vector.shape_cast %5 : vector<2x16x32xf32> to vector<32x32xf32>
    %cst = arith.constant dense<0.000000e+00> : vector<32x16xf32>
    %7 = tpu.matmul %6, %0, %cst {dimension_numbers = #tpu.dot_dimension_numbers<[1], [0], [0], [1], [0, 0, 1, 1], [], []>} : vector<32x32xf32>, vector<32x16xf32>, vector<32x16xf32> -> vector<32x16xf32>
    %8 = vector.extract_strided_slice %7 {offsets = [0, 0], sizes = [32, 8], strides = [1, 1]} : vector<32x16xf32> to vector<32x8xf32>
    %9 = vector.shape_cast %8 : vector<32x8xf32> to vector<2x16x8xf32>
    %10 = vector.extract_strided_slice %7 {offsets = [0, 8], sizes = [32, 8], strides = [1, 1]} : vector<32x16xf32> to vector<32x8xf32>
    %11 = vector.shape_cast %10 : vector<32x8xf32> to vector<2x16x8xf32>
    %cst_10 = arith.constant dense<0.000000e+00> : vector<2x16x16xf32>
    %12 = tpu.matmul %9, %11, %cst_10 {dimension_numbers = #tpu.dot_dimension_numbers<[2], [2], [1], [1], [0, 0, 0, 1, 1, 1], [0], [0]>} : vector<2x16x8xf32>, vector<2x16x8xf32>, vector<2x16x16xf32> -> vector<2x16x16xf32>
    %13 = vector.shape_cast %1 : vector<16x16xf32> to vector<1x16x16xf32>
    %14 = vector.broadcast %13 : vector<1x16x16xf32> to vector<2x16x16xf32>
    %15 = arith.addf %12, %14 : vector<2x16x16xf32>
    %16 = arith.negf %15 : vector<2x16x16xf32>
    %17 = math.exp %16 : vector<2x16x16xf32>
    %cst_11 = arith.constant 1.000000e+00 : f32
    %18 = vector.broadcast %cst_11 : f32 to vector<2x16x16xf32>
    %19 = arith.addf %18, %17 : vector<2x16x16xf32>
    %20 = arith.divf %18, %19 : vector<2x16x16xf32>
    %21 = vector.shape_cast %20 : vector<2x16x16xf32> to vector<32x16xf32>
    %cst_12 = arith.constant dense<0.000000e+00> : vector<32x128xf32>
    %22 = tpu.matmul %21, %2, %cst_12 {dimension_numbers = #tpu.dot_dimension_numbers<[1], [0], [0], [1], [0, 0, 1, 1], [], []>} : vector<32x16xf32>, vector<16x128xf32>, vector<32x128xf32> -> vector<32x128xf32>
    %23 = vector.shape_cast %22 : vector<32x128xf32> to vector<2x16x128xf32>
    %cst_13 = arith.constant dense<0xFF800000> : vector<2x128xf32>
    %24 = vector.multi_reduction <maximumf>, %23, %cst_13 [1] : vector<2x16x128xf32> to vector<2x128xf32>
    %25 = vector.shape_cast %24 : vector<2x128xf32> to vector<2x1x128xf32>
    %26 = vector.broadcast %25 : vector<2x1x128xf32> to vector<2x16x128xf32>
    %27 = arith.subf %23, %26 : vector<2x16x128xf32>
    %28 = math.exp %27 : vector<2x16x128xf32>
    %29 = vector.broadcast %4 : vector<1x1x128xf32> to vector<2x16x128xf32>
    %30 = arith.mulf %28, %29 : vector<2x16x128xf32>
    %c0_14 = arith.constant 0 : index
    %c0_15 = arith.constant 0 : index
    %c0_16 = arith.constant 0 : index
    %31 = vector.load %arg6[%c0_14, %c0_15, %c0_16] : memref<2x16x128xf32, #tpu.memory_space<vmem>>, vector<2x16x128xf32>
    tpu.vector_store %arg6[%c0_14, %c0_15, %c0_16], %30 {strides = array<i32>} : memref<2x16x128xf32, #tpu.memory_space<vmem>>, vector<2x16x128xf32>,
    return
  }
  func.func @transform_0(%arg0: i32) -> (i32, i32, i32) {
    %c0_i32 = arith.constant 0 : i32
    %c0_i32_0 = arith.constant 0 : i32
    %c0_i32_1 = arith.constant 0 : i32
    return %arg0, %c0_i32, %c0_i32_0 : i32, i32, i32
  }
  func.func @transform_1(%arg0: i32) -> (i32, i32) {
    %c0_i32 = arith.constant 0 : i32
    %c0_i32_0 = arith.constant 0 : i32
    %c0_i32_1 = arith.constant 0 : i32
    return %c0_i32, %c0_i32_0 : i32, i32
  }
  func.func @transform_2(%arg0: i32) -> (i32, i32) {
    %c0_i32 = arith.constant 0 : i32
    %c0_i32_0 = arith.constant 0 : i32
    %c0_i32_1 = arith.constant 0 : i32
    return %c0_i32, %c0_i32_0 : i32, i32
  }
  func.func @transform_3(%arg0: i32) -> (i32, i32) {
    %c0_i32 = arith.constant 0 : i32
    %c0_i32_0 = arith.constant 0 : i32
    %c0_i32_1 = arith.constant 0 : i32
    return %c0_i32, %c0_i32_0 : i32, i32
  }
  func.func @transform_4(%arg0: i32) -> (i32, i32) {
    %c0_i32 = arith.constant 0 : i32
    %c0_i32_0 = arith.constant 0 : i32
    %c0_i32_1 = arith.constant 0 : i32
    return %c0_i32, %c0_i32_0 : i32, i32
  }
  func.func @transform_5(%arg0: i32) -> (i32, i32, i32) {
    %c0_i32 = arith.constant 0 : i32
    %c0_i32_0 = arith.constant 0 : i32
    %c0_i32_1 = arith.constant 0 : i32
    return %arg0, %c0_i32, %c0_i32_0 : i32, i32, i32
  }
}

</mosaic_0001>

<bundles_post_ra>
// kernel: tpu_custom_call.1
= control target key start
LH: loop header
LB: loop body
LE: loop exit
PB: predicated region body
PF: predicated region fallthrough
CT: control target
= control target key end

     0   :  { %10 = vsyncpa [#allocation3], 0  ;;  %s804_s0 = inlined_call_operand.vmem [shape: f32[2,16,32], index: 0, kind: input, shape index: {}]   ;;  %s805_s1 = inlined_call_operand.vmem [shape: f32[32,16], index: 1, kind: input, shape index: {}]   ;;  %s806_s2 = inlined_call_operand.vmem [shape: f32[16,16], index: 2, kind: input, shape index: {}]   ;;  %s807_s3 = inlined_call_operand.hbm [shape: f32[16,128], index: 3, kind: input, shape index: {}]   ;;  %s808_s4 = inlined_call_operand.vmem [shape: f32[1,128], index: 4, kind: input, shape index: {}]   ;;  %s809_s5 = inlined_call_operand.hbm [shape: f32[2,16,128], index: 5, kind: output, shape index: {}]  }
   0x1   :  { %11 = vsyncpa [#allocation4], 0  ;;  %s696_s18 = smov [#allocation2]   ;;  %s648_s22 = scalar_lea.hbm %s807_s3, 256 }
   0x2   :  { %s23_s19 = sshll.u32 %s696_s18, 4  ;;  %p649_p0 = scmp.ne.s32.totalorder %s807_s3, %s648_s22  ;;  %s24_s19 = int_to_ptr.vmem [resolvable:$true] %s23_s19 }
   0x3   :  { %p652_p1 = scmp.lt.u32.totalorder %s648_s22, %s807_s3 }
   0x5   :  { %p654_p2 = pnand %p652_p1, %p649_p0 }
   0x7   :  { %657 = shalt.err (!%p654_p2)
}
   0x8   :  { %s658_s27 = scalar_lea.vmem %s24_s19, 256  ;;  %p663_p4 = scmp.lt.s32.totalorder %s24_s19, %s24_s19 }
   0x9   :  { %p659_p3 = scmp.ne.s32.totalorder %s24_s19, %s658_s27  ;;  %p664_p5 = scmp.lt.s32.totalorder %s658_s27, %s658_s27 }
   0xb   :  { %p665_p6 = por %p664_p5, %p663_p4 }
   0xd   :  { %p666_p7 = pnand %p665_p6, %p659_p3 }
   0xf   :  { %669 = shalt.err (!%p666_p7)
}
  0x10   :  { %s697_s28 = smov 128   ;;  %s698_s29 = smov 8  }
  0x11   :  { %29 = dma.hbm_to_vmem [thread:$0]  %s807_s3, 256, %s24_s19, [#allocation3], %s697_s28, %s697_s28, %s698_s29  }
  0x12   :  { %692 = dma.done.wait [#allocation3], 256  }
  0x13   :  { %693 = vsyncadd [#allocation3], 4294967040  ;;  %vm48_vm0 = vcmask 261120   ;;  %v35_v0 = vld [vmem:[%s805_s1] sm:$0xff]  ;;  %v36_v1 = vld [vmem:[%s805_s1 + $0x8] sm:$0xff]  ;;  %vm152_vm1 = vcmask 64512  }
  0x14   :  { %v37_v2 = vld [vmem:[%s805_s1 + $0x10] sm:$0xff]  ;;  %v585_v3 = vpack.c.bf16 %v36_v1, %v35_v0  ;;  %v38_v4 = vld [vmem:[%s805_s1 + $0x18] sm:$0xff]  ;;  %v44_v5 = vld [vmem:[%s804_s0] sm:$0xff]  ;;  %s699_s21 = smov 120   ;;  %vm349_vm3 = vcmask 130048   ;;  %s700_s26 = smov [#allocation5]  }
  0x15   :  { %v589_v6 = vpack.c.bf16 %v38_v4, %v37_v2  ;;  %555 = vmatprep.mubr.msk.f32.mxu0 %vm48_vm0, %v44_v5  ;;  %v45_v7 = vld [vmem:[%s804_s0 + $0x8] sm:$0xff]  ;;  %v46_v8 = vld [vmem:[%s804_s0 + $0x10] sm:$0xff]  ;;  %v47_v9 = vld [vmem:[%s804_s0 + $0x18] sm:$0xff]  ;;  %s492_s27 = sshll.u32 %s700_s26, 4  ;;  %s493_s27 = int_to_ptr.vmem [resolvable:$true] %s492_s27 }
  0x16   :  { %586 = vmatprep.subr.bf16.mxu0 %v585_v3  ;;  %vm594_vm2 = vmpackc.low %vm152_vm1, %vm152_vm1  ;;  %v41_v24 = vld [vmem:[#allocation2] sm:$0xff]  ;;  %v42_v25 = vld [vmem:[#allocation2 + $0x8] sm:$0xff]  ;;  %s670_s30 = scalar_lea.vmem %s493_s27, 512  ;;  %p675_p9 = scmp.lt.s32.totalorder %s493_s27, %s493_s27 }
  0x17   :  { %588 = vmatpush3.bf16.msra.mxu0 %v585_v3  ;;  %v605_v26 = vpack.c.bf16 %v42_v25, %v41_v24  ;;  %v40_v27 = vld [vmem:[%s806_s2 + $0x8] sm:$0xff]  ;;  %v39_v28 = vld [vmem:[%s806_s2] sm:$0xff]  ;;  %p671_p8 = scmp.ne.s32.totalorder %s493_s27, %s670_s30  ;;  %p676_p10 = scmp.lt.s32.totalorder %s670_s30, %s670_s30 }
  0x18   :  { %590 = vmatprep.subr.bf16.mxu0 %v589_v6 }
  0x19   :  { %p677_p11 = por %p676_p10, %p675_p9 }
  0x1b   :  { %592 = vmatpush3.bf16.msra.mxu0 %v589_v6  ;;  %p678_p12 = pnand %p677_p11, %p671_p8 }
  0x1e   :  { %556 = vmatmul.mubr.msk.f32.vlgmr.msra.gmra.mrb[0].mxu0 %vm48_vm0, %v45_v7 }
  0x1f   :  { %558 = vmatprep.mubr.msk.f32.mxu0 %vm48_vm0, %v46_v8 }
  0x22   :  { %559 = vmatmul.mubr.msk.f32.gmra.mrb[2].mxu0 %vm48_vm0, %v47_v9 }
  0xf1   :  { %v557_v10 = vpop.f32.mrb[0].mxu0 }
  0xf2   :  { %v127_v11 = vpop.f32.mrb[1].mxu0 }
  0xf3   :  { %565 = vmatprep.mubr.msk.f32.mxu1 %vm152_vm1, %v127_v11  ;;  %v614_v12 = vpack.i.bf16 %v557_v10, %v127_v11 }
  0xf5   :  { %615 = vrot.lane.b32.xlu0 %v614_v12, %s699_s21  ;;  %v560_v13 = vpop.f32.mrb[2].mxu0 }
  0xf6   :  { %v137_v14 = vpop.f32.mrb[3].mxu0 }
  0xf7   :  { %v619_v15 = vpack.i.bf16 %v560_v13, %v137_v14  ;;  %572 = vmatprep.mubr.msk.f32.mxu0 %vm152_vm1, %v137_v14 }
  0xf9   :  { %620 = vrot.lane.b32.xlu0 %v619_v15, %s699_s21  ;;  %v524_v15 = vld [vmem:[%s808_s4] ss:$0 sm:$0xff] }
 0x167   :  { %v616_v16 = vpop.permute.xlu0 %615 }
 0x168   :  { %v618_v17 = vunpack.i.h.bf16 %v616_v16  ;;  %v617_v18 = vunpack.i.l.bf16 %v616_v16 }
 0x16a   :  { %v593_v19 = vpack.c.bf16 %v618_v17, %v617_v18 }
 0x16b   :  { %v621_v20 = vpop.permute.xlu0 %620 }
 0x16c   :  { %v623_v21 = vunpack.i.h.bf16 %v621_v20  ;;  %v622_v22 = vunpack.i.l.bf16 %v621_v20  ;;  %595 = vmatprep.subr.msk.bf16.mxu1 %vm594_vm2, %v593_v19 }
 0x16d   :  { %598 = vmatpush3.bf16.xpose.msk.msra.mxu1 %vm594_vm2, %v593_v19 }
 0x16e   :  { %v599_v23 = vpack.c.bf16 %v623_v21, %v622_v22  ;;  %606 = vmatprep.subr.bf16.mxu1 %v605_v26 }
 0x170   :  { %601 = vmatprep.subr.msk.bf16.mxu0 %vm594_vm2, %v599_v23 }
 0x171   :  { %604 = vmatpush3.bf16.xpose.msk.msra.mxu0 %vm594_vm2, %v599_v23 }
 0x174   :  { %566 = vmatmul.mubr.msk.f32.vlgmr.msra.gmra.mrb[0].mxu1 %vm152_vm1, %v557_v10 }
 0x175   :  { %608 = vmatpush3.bf16.msra.mxu1 %v605_v26 }
 0x178   :  { %573 = vmatmul.mubr.msk.f32.vlgmr.msra.gmra.mrb[4].mxu0 %vm152_vm1, %v560_v13 }
 0x247   :  { %v567_v29 = vpop.f32.mrb[0].mxu1 }
 0x248   :  { %v233_v30 = vadd.f32 %v567_v29, %v40_v27  ;;  %v227_v31 = vpop.f32.mrb[1].mxu1 }
 0x249   :  { %v228_v32 = vadd.f32 %v227_v31, %v39_v28 }
 0x24a   :  { %v517_v33 = vmul.f32 -1.442695, %v233_v30 }
 0x24b   :  { %v516_v34 = vmul.f32 -1.442695, %v228_v32  ;;  %v574_v35 = vpop.f32.mrb[4].mxu0 }
 0x24c   :  { %624 = vpow2.f32 %v517_v33  ;;  %v322_v36 = vadd.f32 %v574_v35, %v40_v27  ;;  %v316_v37 = vpop.f32.mrb[5].mxu0 }
 0x24d   :  { %626 = vpow2.f32 %v516_v34  ;;  %v317_v38 = vadd.f32 %v316_v37, %v39_v28 }
 0x24e   :  { %v519_v39 = vmul.f32 -1.442695, %v322_v36 }
 0x24f   :  { %v518_v40 = vmul.f32 -1.442695, %v317_v38 }
 0x250   :  { %628 = vpow2.f32 %v519_v39 }
 0x251   :  { %630 = vpow2.f32 %v518_v40 }
 0x256   :  { %v625_v41 = vpop.eup %624 }
 0x257   :  { %v627_v42 = vpop.eup %626  ;;  %v338_v43 = vadd.f32 1.0, %v625_v41 }
 0x258   :  { %v337_v44 = vadd.f32 1.0, %v627_v42 }
 0x25a   :  { %v629_v45 = vpop.eup %628  ;;  %632 = vrcp.f32 %v337_v44 }
 0x25b   :  { %v631_v46 = vpop.eup %630  ;;  %634 = vrcp.f32 %v338_v43  ;;  %v340_v47 = vadd.f32 1.0, %v629_v45 }
 0x25c   :  { %v339_v48 = vadd.f32 1.0, %v631_v46 }
 0x25e   :  { %636 = vrcp.f32 %v339_v48 }
 0x25f   :  { %638 = vrcp.f32 %v340_v47 }
 0x264   :  { %v633_v49 = vpop.eup %632 }
 0x265   :  { %v635_v50 = vpop.eup %634  ;;  %579 = vmatprep.mubr.msk.f32.mxu1 %vm349_vm3, %v633_v49 }
 0x266   :  { %580 = vmatmul.mubr.msk.f32.vlgmr.msra.gmra.mrb[2].mxu1 %vm349_vm3, %v635_v50 }
 0x268   :  { %v637_v51 = vpop.eup %636 }
 0x269   :  { %v639_v52 = vpop.eup %638  ;;  %582 = vmatprep.mubr.msk.f32.mxu1 %vm349_vm3, %v637_v51 }
 0x26a   :  { %583 = vmatmul.mubr.msk.f32.gmra.mrb[4].mxu1 %vm349_vm3, %v639_v52 }
 0x339   :  { %v581_v53 = vpop.f32.mrb[2].mxu1 }
 0x33a   :  { %v428_v54 = vpop.f32.mrb[3].mxu1 }
 0x33b   :  { %v447_v55 = vmax.f32 %v428_v54, %v581_v53 }
 0x33d   :  { %v448_v56 = vrot.slane %v447_v55, 4  ;;  %v584_v57 = vpop.f32.mrb[4].mxu1 }
 0x33e   :  { %v438_v58 = vpop.f32.mrb[5].mxu1 }
 0x33f   :  { %v449_v59 = vmax.f32 %v447_v55, %v448_v56  ;;  %v454_v60 = vmax.f32 %v438_v58, %v584_v57 }
 0x341   :  { %v450_v61 = vrot.slane %v449_v59, 2  ;;  %v455_v62 = vrot.slane %v454_v60, 4 }
 0x343   :  { %v451_v63 = vmax.f32 %v449_v59, %v450_v61  ;;  %v456_v0 = vmax.f32 %v454_v60, %v455_v62 }
 0x345   :  { %v452_v1 = vrot.slane %v451_v63, 1  ;;  %v457_v2 = vrot.slane %v456_v0, 2 }
 0x347   :  { %v453_v3 = vmax.f32 %v451_v63, %v452_v1  ;;  %v458_v4 = vmax.f32 %v456_v0, %v457_v2 }
 0x349   :  { %v461_v5 = vsub.f32 %v428_v54, %v453_v3  ;;  %v462_v6 = vsub.f32 %v581_v53, %v453_v3  ;;  %v459_v7 = vrot.slane %v458_v4, 1 }
 0x34b   :  { %v465_v8 = vmul.f32 1.442695, %v461_v5  ;;  %v467_v9 = vmul.f32 1.442695, %v462_v6  ;;  %v460_v10 = vmax.f32 %v458_v4, %v459_v7 }
 0x34d   :  { %640 = vpow2.f32 %v465_v8  ;;  %v463_v11 = vsub.f32 %v438_v58, %v460_v10  ;;  %v464_v12 = vsub.f32 %v584_v57, %v460_v10 }
 0x34e   :  { %642 = vpow2.f32 %v467_v9 }
 0x34f   :  { %v469_v13 = vmul.f32 1.442695, %v463_v11  ;;  %v471_v14 = vmul.f32 1.442695, %v464_v12 }
 0x351   :  { %644 = vpow2.f32 %v469_v13 }
 0x352   :  { %646 = vpow2.f32 %v471_v14 }
 0x357   :  { %v641_v16 = vpop.eup %640 }
 0x358   :  { %v643_v17 = vpop.eup %642  ;;  %v479_v18 = vmul.f32 %v641_v16, %v524_v15 }
 0x359   :  { %v480_v19 = vmul.f32 %v643_v17, %v524_v15 }
 0x35a   :  { %483 = vst [vmem:[#allocation5] sm:$0xff] %v479_v18 }
 0x35b   :  { %v645_v20 = vpop.eup %644  ;;  %484 = vst [vmem:[#allocation5 + $0x8] sm:$0xff] %v480_v19 }
 0x35c   :  { %v647_v21 = vpop.eup %646  ;;  %v481_v22 = vmul.f32 %v645_v20, %v524_v15 }
 0x35d   :  { %v482_v23 = vmul.f32 %v647_v21, %v524_v15 }
 0x35e   :  { %485 = vst [vmem:[#allocation5 + $0x10] sm:$0xff] %v481_v22 }
 0x35f   :  { %486 = vst [vmem:[#allocation5 + $0x18] sm:$0xff] %v482_v23 }
 0x360   :  { %681 = shalt.err (!%p678_p12)
}
 0x361   :  { %s682_s7 = scalar_lea.hbm %s809_s5, 512 }
 0x362   :  { %p683_p13 = scmp.ne.s32.totalorder %s809_s5, %s682_s7  ;;  %p686_p0 = scmp.lt.u32.totalorder %s682_s7, %s809_s5 }
 0x364   :  { %p688_p1 = pnand %p686_p0, %p683_p13 }
 0x366   :  { %691 = shalt.err (!%p688_p1)
}
 0x367   :  { %498 = dma.vmem_to_hbm [thread:$0]  %s493_s27, 512, %s809_s5, [#allocation4], %s697_s28, %s697_s28, %s698_s29  }
 0x368   :  { %694 = dma.done.wait [#allocation4], 512  }
 0x369   :  { %695 = vsyncadd [#allocation4], 4294966784 }
 0x36a   :  { %502 = vsyncpa [#allocation3], 1 }
 0x36b   :  { %503 = vsyncpa [#allocation4], 1 }

</bundles_post_ra>
